<compile_context>
chip_gen: v7x
topology: tpu7x:2x2x1
jax: 0.10.0
libtpu: 0.0.40
codegen_flags: <defaults>
</compile_context>

<pallas_src>
import functools

import jax
import jax.numpy as jnp
from jax.experimental import pallas as pl
from jax.experimental.pallas import tpu as pltpu

GROWTH = 40  # EDANet growth rate
ENC_CHANNELS = [15, 60, 130, 450]
DEC_CHANNELS = [450, 260, 15, 3]


# ---------------------------------------------------------------------------
# Pallas kernel: fused  Y = act(X @ W + bias)
#   X, W tiles are bf16 (MXU native), accumulation + epilogue in f32.
#   grid = (M tiles, N tiles); K is a single full-extent block (max K here is
#   9*260 = 2340, so the K slab always fits VMEM and X is never padded along K).
# ---------------------------------------------------------------------------
def _mm_bias_act_kernel(x_ref, w_ref, b_ref, o_ref, *, act):
    acc = jnp.dot(x_ref[...], w_ref[...], preferred_element_type=jnp.float32)
    y = acc + b_ref[...]
    if act == "relu":
        y = jnp.maximum(y, 0.0)
    elif act == "tanh":
        y = jnp.tanh(y)
    o_ref[...] = y.astype(o_ref.dtype)


def _round_up(v, m):
    return ((v + m - 1) // m) * m


@functools.lru_cache(maxsize=None)
def _get_mm_fn(act, Mp, K, Np, tm, tn):
    kern = functools.partial(_mm_bias_act_kernel, act=act)
    return pl.pallas_call(
        kern,
        out_shape=jax.ShapeDtypeStruct((Mp, Np), jnp.float32),
        grid=(Mp // tm, Np // tn),
        in_specs=[
            pl.BlockSpec((tm, K), lambda i, j: (i, 0)),   # X row-tile, full K
            pl.BlockSpec((K, tn), lambda i, j: (0, j)),   # W col-tile, full K
            pl.BlockSpec((1, tn), lambda i, j: (0, j)),   # bias col-tile
        ],
        out_specs=pl.BlockSpec((tm, tn), lambda i, j: (i, j)),
        compiler_params=pltpu.CompilerParams(
            dimension_semantics=("parallel", "parallel")),
    )


def matmul_bias_act(x, w, bias, act):
    """act(x @ w + bias).  x:(M,K) bf16, w:(K,N) bf16, bias:(N,) f32 -> (M,N) f32."""
    M, K = x.shape
    _, N = w.shape
    # M tile: single whole-M block while small; 256-row tiles (multi-block,
    # megacore-parallel on v7x) once M grows past 256.
    tm = 256 if M > 256 else _round_up(M, 8)
    Mp = _round_up(M, tm)
    # N tile: lane-dense 128/256 wide output tiles.
    Np = _round_up(N, 128)
    tn = 256 if Np % 256 == 0 else 128
    xp = jnp.pad(x, ((0, Mp - M), (0, 0)))              # K is NOT padded
    wp = jnp.pad(w, ((0, 0), (0, Np - N)))              # pad only tiny weight along N
    bp = jnp.pad(bias.reshape(1, -1), ((0, 0), (0, Np - N)))
    out = _get_mm_fn(act, Mp, K, Np, tm, tn)(xp, wp, bp)
    return out[:M, :N]


# ---------------------------------------------------------------------------
# Convolution = im2col (fused into this per-conv jit) + Pallas fused matmul
# ---------------------------------------------------------------------------
# TODO(synk): the im2col gather (and the nearest-neighbor upsample in conv_block)
#             is still materialized by XLA as the pallas_call operand rather than
#             gathered inside the kernel; fusing the shifted reads / a whole EDA
#             module (1x1->3x1->1x3->3x1->1x3 with k=40 intermediates in VMEM)
#             into a single pallas_call is the next step.
@functools.partial(jax.jit, static_argnames=("stride", "padding", "dilation", "act"))
def conv2d_pallas(x, w, bias, *, stride, padding, dilation, act):
    N, H, W, Cin = x.shape
    kh, kw, _, Cout = w.shape
    sh, sw = stride
    ph, pw = padding
    dh, dw = dilation
    x = x.astype(jnp.bfloat16)     # halve im2col + matmul-input HBM traffic
    w = w.astype(jnp.bfloat16)
    Hout = (H + 2 * ph - dh * (kh - 1) - 1) // sh + 1
    Wout = (W + 2 * pw - dw * (kw - 1) - 1) // sw + 1
    if kh == 1 and kw == 1 and sh == 1 and sw == 1 and ph == 0 and pw == 0:
        pat = x.reshape(N * H * W, Cin)
    else:
        xpad = jnp.pad(x, ((0, 0), (ph, ph), (pw, pw), (0, 0)))
        patches = []
        for i in range(kh):
            for j in range(kw):
                patches.append(
                    xpad[:, i * dh: i * dh + sh * (Hout - 1) + 1: sh,
                         j * dw: j * dw + sw * (Wout - 1) + 1: sw, :])
        pat = jnp.concatenate(patches, axis=-1).reshape(
            N * Hout * Wout, kh * kw * Cin)
    wm = w.reshape(kh * kw * Cin, Cout)
    out = matmul_bias_act(pat, wm, bias, act)
    return out.reshape(N, Hout, Wout, Cout)


# ---------------------------------------------------------------------------
# Deterministic parameter generation
# ---------------------------------------------------------------------------
class ParamGen:
    def __init__(self, seed):
        self._key = jax.random.PRNGKey(seed)

    def _next(self):
        self._key, k = jax.random.split(self._key)
        return k

    def conv(self, kh, kw, cin, cout):
        fan_in = float(kh * kw * cin)
        w = jax.random.normal(self._next(), (kh, kw, cin, cout), jnp.float32) / jnp.sqrt(fan_in)
        # Eval-mode BatchNorm (gamma=1, beta=0, fresh stats) folded into (w, b):
        # with all-ones scale this leaves w unchanged and b zero, so the kernel
        # epilogue only needs bias + activation (scale stream removed).
        b = jnp.zeros((cout,), jnp.float32)
        return w, b


def conv(pg, x, cin, cout, kh, kw, *, stride=(1, 1), padding=(0, 0),
         dilation=(1, 1), act="none"):
    w, b = pg.conv(kh, kw, cin, cout)
    return conv2d_pallas(x, w, b, stride=stride, padding=padding,
                         dilation=dilation, act=act)


# ---------------------------------------------------------------------------
# EDANet building blocks
# ---------------------------------------------------------------------------
def downsampler(pg, x, cin, cout):
    """EDANet downsampling block: 3x3 s2 conv (+ 2x2 maxpool concat when cout>cin), BN, ReLU."""
    if cout > cin:
        conv_out = conv(pg, x, cin, cout - cin, 3, 3, stride=(2, 2),
                        padding=(1, 1), act="relu")
        n, h, w, _ = x.shape
        pool = x.reshape(n, h // 2, 2, w // 2, 2, cin).max(axis=(2, 4))
        pool = jnp.maximum(pool, 0.0)  # ReLU of identity-BN pooled branch
        return jnp.concatenate([conv_out, pool], axis=-1)
    return conv(pg, x, cin, cout, 3, 3, stride=(2, 2), padding=(1, 1), act="relu")


def eda_encoder_block(pg, x, cin, k, d):
    """EDA module (encoder): dense concat, channels grow by k."""
    y = conv(pg, x, cin, k, 1, 1, act="relu")
    y = conv(pg, y, k, k, 3, 1, padding=(1, 0), act="relu")
    y = conv(pg, y, k, k, 1, 3, padding=(0, 1), act="relu")
    y = conv(pg, y, k, k, 3, 1, padding=(d, 0), dilation=(d, 1), act="relu")
    y = conv(pg, y, k, k, 1, 3, padding=(0, d), dilation=(1, d), act="relu")
    # dropout (p=0.02) is identity in eval
    return jnp.concatenate([x, y], axis=-1)


def eda_decoder_block(pg, x, cin, cout, k, d):
    """EDANetResidualBlock(encoder=False): channel-reducing residual variant."""
    # TODO(synk): exact decoder-mode internals unavailable; mirrored EDA pipeline
    #             with a 1x1 projection residual.
    y = conv(pg, x, cin, k, 1, 1, act="relu")
    y = conv(pg, y, k, k, 3, 1, padding=(1, 0), act="relu")
    y = conv(pg, y, k, k, 1, 3, padding=(0, 1), act="relu")
    y = conv(pg, y, k, k, 3, 1, padding=(d, 0), dilation=(d, 1), act="relu")
    y = conv(pg, y, k, k, 1, 3, padding=(0, d), dilation=(1, d), act="relu")
    y = conv(pg, y, k, cout, 1, 1, act="none")
    res = conv(pg, x, cin, cout, 1, 1, act="none")
    return jnp.maximum(y + res, 0.0)


def conv_block(pg, x, cin, cout, *, activation, upsample_factor=2, final_tanh=False):
    """common_blocks.ConvBlock with upsampling: nearest x2 -> 3x3 conv -> (BN, ReLU)."""
    x = jnp.repeat(jnp.repeat(x, upsample_factor, axis=1), upsample_factor, axis=2)
    act = "relu" if activation else ("tanh" if final_tanh else "none")
    return conv(pg, x, cin, cout, 3, 3, padding=(1, 1), act=act)


# ---------------------------------------------------------------------------
# Full EDANet_AE forward (flatten_bottleneck=False, compress_bottleneck=False)
# ---------------------------------------------------------------------------
def edanet_ae_forward(x_nchw, seed=0):
    pg = ParamGen(seed)
    x = jnp.transpose(x_nchw, (0, 2, 3, 1)).astype(jnp.float32)  # NCHW -> NHWC

    # ---------------- Encoder ----------------
    # stage 1 (dilations [0]): downsample 3 -> 15
    x = downsampler(pg, x, 3, ENC_CHANNELS[0])
    # stage 2 (dilations [0,1,1,1,2,2]): downsample 15 -> 60, 5 EDA modules
    x = downsampler(pg, x, ENC_CHANNELS[0], ENC_CHANNELS[1])
    c = ENC_CHANNELS[1]
    for d in [1, 1, 1, 2, 2]:
        x = eda_encoder_block(pg, x, c, GROWTH, d)
        c += GROWTH                                            # -> 260
    # stage 3 (dilations [0,2,2,4,4,8,8,16,16]): downsample 260 -> 130, 8 EDA modules
    x = downsampler(pg, x, c, ENC_CHANNELS[2])
    c = ENC_CHANNELS[2]
    for d in [2, 2, 4, 4, 8, 8, 16, 16]:
        x = eda_encoder_block(pg, x, c, GROWTH, d)
        c += GROWTH                                            # -> 450

    # ---------------- Bottleneck / bridge ----------------
    # flatten_bottleneck=False and compress_bottleneck=False -> empty Sequentials (identity)

    # ---------------- Decoder ----------------
    # stage 1: residual blocks with dilations 16,16,8,8,4,4,2,2 then ConvBlock 130 -> 260 (x2 up)
    for d in [16, 16, 8, 8, 4, 4, 2, 2]:
        x = eda_decoder_block(pg, x, c, c - GROWTH, GROWTH, d)
        c -= GROWTH                                            # -> 130
    x = conv_block(pg, x, c, DEC_CHANNELS[1], activation=True)
    c = DEC_CHANNELS[1]
    # stage 2: dilations 2,2,1,1,1 then ConvBlock 60 -> 15 (x2 up)
    for d in [2, 2, 1, 1, 1]:
        x = eda_decoder_block(pg, x, c, c - GROWTH, GROWTH, d)
        c -= GROWTH                                            # -> 60
    x = conv_block(pg, x, c, DEC_CHANNELS[2], activation=True)
    c = DEC_CHANNELS[2]
    # stage 3: ConvBlock 15 -> 3 (x2 up, no BN, no ReLU) followed by tanh (fused in kernel)
    x = conv_block(pg, x, c, DEC_CHANNELS[3], activation=False, final_tanh=True)

    return jnp.transpose(x, (0, 3, 1, 2))  # NHWC -> NCHW


# ---------------------------------------------------------------------------
if __name__ == "__main__":
    key = jax.random.PRNGKey(0)
    # input_res = (16, 16), 3-channel RGB input, batch 2 (downsample factor 8 -> 2x2 bottleneck)
    x = jax.random.normal(key, (2, 3, 16, 16), dtype=jnp.float32)

    out = edanet_ae_forward(x, seed=0)
    out = jax.block_until_ready(out)

    assert out.shape == (2, 3, 16, 16), out.shape
    assert bool(jnp.all(jnp.isfinite(out)))
    print("KERNEL_OK")
</pallas_src>

<mosaic_0001>
module attributes {stable_mosaic.version = 11 : i64} {
  func.func @_mm_bias_act_kernel(%arg0: i32, %arg1: i32, %arg2: memref<128x27xbf16, #tpu.memory_space<vmem>>, %arg3: memref<27x128xbf16, #tpu.memory_space<vmem>>, %arg4: memref<1x128xf32, #tpu.memory_space<vmem>>, %arg5: memref<128x128xf32, #tpu.memory_space<vmem>>) attributes {dimension_semantics = [#tpu.dimension_semantics<parallel>, #tpu.dimension_semantics<parallel>], iteration_bounds = array<i64: 1, 1>, scalar_prefetch = 0 : i64, scratch_operands = 0 : i64, tpu.core_type = #tpu.core_type<tc>, window_params = [{transform_indices = @transform_0, window_bounds = array<i64: 128, 27>}, {transform_indices = @transform_1, window_bounds = array<i64: 27, 128>}, {transform_indices = @transform_2, window_bounds = array<i64: 1, 128>}, {transform_indices = @transform_3, window_bounds = array<i64: 128, 128>}]} {
    %c0 = arith.constant 0 : index
    %c0_0 = arith.constant 0 : index
    %0 = vector.load %arg2[%c0, %c0_0] : memref<128x27xbf16, #tpu.memory_space<vmem>>, vector<128x27xbf16>
    %c0_1 = arith.constant 0 : index
    %c0_2 = arith.constant 0 : index
    %1 = vector.load %arg3[%c0_1, %c0_2] : memref<27x128xbf16, #tpu.memory_space<vmem>>, vector<27x128xbf16>
    %cst = arith.constant dense<0.000000e+00> : vector<128x128xf32>
    %2 = tpu.matmul %0, %1, %cst {dimension_numbers = #tpu.dot_dimension_numbers<[1], [0], [0], [1], [0, 0, 1, 1], [], []>} : vector<128x27xbf16>, vector<27x128xbf16>, vector<128x128xf32> -> vector<128x128xf32>
    %c0_3 = arith.constant 0 : index
    %c0_4 = arith.constant 0 : index
    %3 = vector.load %arg4[%c0_3, %c0_4] : memref<1x128xf32, #tpu.memory_space<vmem>>, vector<1x128xf32>
    %4 = vector.broadcast %3 : vector<1x128xf32> to vector<128x128xf32>
    %5 = arith.addf %2, %4 : vector<128x128xf32>
    %cst_5 = arith.constant 0.000000e+00 : f32
    %6 = vector.broadcast %cst_5 : f32 to vector<128x128xf32>
    %7 = arith.maximumf %5, %6 : vector<128x128xf32>
    %c0_6 = arith.constant 0 : index
    %c0_7 = arith.constant 0 : index
    %8 = vector.load %arg5[%c0_6, %c0_7] : memref<128x128xf32, #tpu.memory_space<vmem>>, vector<128x128xf32>
    tpu.vector_store %arg5[%c0_6, %c0_7], %7 {strides = array<i32>} : memref<128x128xf32, #tpu.memory_space<vmem>>, vector<128x128xf32>,
    return
  }
  func.func @transform_0(%arg0: i32, %arg1: i32) -> (i32, i32) {
    %c0_i32 = arith.constant 0 : i32
    %c0_i32_0 = arith.constant 0 : i32
    return %arg0, %c0_i32 : i32, i32
  }
  func.func @transform_1(%arg0: i32, %arg1: i32) -> (i32, i32) {
    %c0_i32 = arith.constant 0 : i32
    %c0_i32_0 = arith.constant 0 : i32
    return %c0_i32, %arg1 : i32, i32
  }
  func.func @transform_2(%arg0: i32, %arg1: i32) -> (i32, i32) {
    %c0_i32 = arith.constant 0 : i32
    %c0_i32_0 = arith.constant 0 : i32
    return %c0_i32, %arg1 : i32, i32
  }
  func.func @transform_3(%arg0: i32, %arg1: i32) -> (i32, i32) {
    %c0_i32 = arith.constant 0 : i32
    return %arg0, %arg1 : i32, i32
  }
}

</mosaic_0001>

<bundles_post_ra>
// kernel: conv2d_pallas.1
= control target key start
LH: loop header
LB: loop body
LE: loop exit
PB: predicated region body
PF: predicated region fallthrough
CT: control target
= control target key end

     0   :  { %vm119_vm0 = vcmask 1044480   ;;  %vm120_vm1 = vcmask 1045504   ;;  %v362_v2 = vmov 65535   ;;  %vm94_vm2 = vcmask 220160   ;;  %s439_s0 = inlined_call_operand.vmem [shape: bf16[128,27], index: 0, kind: input, shape index: {}]   ;;  %s440_s1 = inlined_call_operand.vmem [shape: bf16[27,128], index: 1, kind: input, shape index: {}]   ;;  %s441_s2 = inlined_call_operand.vmem [shape: f32[1,128], index: 2, kind: input, shape index: {}]   ;;  %s442_s3 = inlined_call_operand.hbm [shape: f32[128,128], index: 3, kind: output, shape index: {}]  }
   0x1   :  { %v328_v0 = vld [vmem:[%s440_s1] sm:$0xff]   ;;  %v329_v1 = vld [vmem:[%s440_s1 + $0x8] sm:$0x3f]   ;;  %v121_v3 = vsel %vm119_vm0, 4294967295, %v362_v2  ;;  %v334_v10 = vld [vmem:[%s439_s0 + $0x10] sm:$0xff]  }
   0x2   :  { %300 = vmatprep.subr.bf16.mxu0 %v328_v0  ;;  %320 = vmatprep.subr.bf16.mxu1 %v328_v0  ;;  %v330_v4 = vld [vmem:[%s439_s0] sm:$0xff]   ;;  %v122_v6 = vsel %vm120_vm1, %v121_v3, 0  ;;  %v332_v8 = vld [vmem:[%s439_s0 + $0x8] sm:$0xff]   ;;  %v335_v11 = vld [vmem:[%s439_s0 + $0x30] sm:$0xff]  }
   0x3   :  { %301 = vmatpush3.bf16.msra.mxu0 %v328_v0  ;;  %322 = vmatpush3.bf16.msra.mxu1 %v328_v0  ;;  %v331_v5 = vld [vmem:[%s439_s0 + $0x20] sm:$0xff]   ;;  %v124_v7 = vand.u32 %v329_v1, %v122_v6  ;;  %v333_v9 = vld [vmem:[%s439_s0 + $0x28] sm:$0xff]  }
   0x4   :  { %304 = vmatprep.mubr.msk.bf16.mxu0 %vm94_vm2, %v330_v4  ;;  %312 = vmatprep.mubr.msk.bf16.mxu1 %vm94_vm2, %v331_v5 }
   0x5   :  { %302 = vmatprep.subr.bf16.mxu0 %v124_v7  ;;  %321 = vmatprep.subr.bf16.mxu1 %v124_v7 }
   0x7   :  { %303 = vmatpush3.bf16.msra.mxu0 %v124_v7  ;;  %323 = vmatpush3.bf16.msra.mxu1 %v124_v7 }
   0x8   :  { %8 = vsyncpa [#allocation3], 0  ;;  %v336_v12 = vld [vmem:[%s439_s0 + $0x18] sm:$0xff]   ;;  %v271_v14 = vld [vmem:[%s441_s2] ss:$0 sm:$0xff] }
   0x9   :  { %v337_v13 = vld [vmem:[%s439_s0 + $0x38] sm:$0xff]   ;;  %s363_s0 = smov [#allocation2]  }
   0xa   :  { %305 = vmatmul.mubr.msk.bf16.vlgmr.msra.gmra.mrb[0].mxu0 %vm94_vm2, %v332_v8  ;;  %313 = vmatmul.mubr.msk.bf16.vlgmr.msra.gmra.mrb[0].mxu1 %vm94_vm2, %v333_v9  ;;  %s260_s2 = sshll.u32 %s363_s0, 4  ;;  %s261_s2 = int_to_ptr.vmem [resolvable:$true] %s260_s2 }
   0xb   :  { %308 = vmatprep.mubr.msk.bf16.mxu0 %vm94_vm2, %v334_v10  ;;  %316 = vmatprep.mubr.msk.bf16.mxu1 %vm94_vm2, %v335_v11  ;;  %s338_s6 = scalar_lea.vmem %s261_s2, 2048  ;;  %p343_p1 = scmp.lt.s32.totalorder %s261_s2, %s261_s2 }
   0xc   :  { %p339_p0 = scmp.ne.s32.totalorder %s261_s2, %s338_s6  ;;  %p344_p2 = scmp.lt.s32.totalorder %s338_s6, %s338_s6 }
   0xe   :  { %p345_p3 = por %p344_p2, %p343_p1 }
  0x10   :  { %p346_p4 = pnand %p345_p3, %p339_p0 }
  0x12   :  { %309 = vmatmul.mubr.msk.bf16.gmra.mrb[4].mxu0 %vm94_vm2, %v336_v12  ;;  %317 = vmatmul.mubr.msk.bf16.gmra.mrb[4].mxu1 %vm94_vm2, %v337_v13 }
  0xdd   :  { %v306_v15 = vpop.f32.mrb[0].mxu0  ;;  %v314_v16 = vpop.f32.mrb[0].mxu1 }
  0xde   :  { %v169_v17 = vadd.f32 %v306_v15, %v271_v14  ;;  %v201_v18 = vadd.f32 %v314_v16, %v271_v14  ;;  %v160_v19 = vpop.f32.mrb[1].mxu0  ;;  %v192_v20 = vpop.f32.mrb[1].mxu1 }
  0xdf   :  { %v161_v21 = vadd.f32 %v271_v14, %v160_v19  ;;  %v193_v22 = vadd.f32 %v271_v14, %v192_v20  ;;  %v307_v23 = vpop.f32.mrb[2].mxu0  ;;  %v315_v24 = vpop.f32.mrb[2].mxu1 }
  0xe0   :  { %v225_v25 = vmax.f32 %v169_v17, 0.0  ;;  %v233_v26 = vmax.f32 %v201_v18, 0.0  ;;  %v172_v27 = vadd.f32 %v307_v23, %v271_v14  ;;  %v204_v28 = vadd.f32 %v315_v24, %v271_v14  ;;  %v163_v29 = vpop.f32.mrb[3].mxu0  ;;  %v195_v30 = vpop.f32.mrb[3].mxu1 }
  0xe1   :  { %v223_v31 = vmax.f32 %v161_v21, 0.0  ;;  %v231_v32 = vmax.f32 %v193_v22, 0.0  ;;  %v164_v33 = vadd.f32 %v271_v14, %v163_v29  ;;  %v196_v34 = vadd.f32 %v271_v14, %v195_v30 }
  0xe2   :  { %241 = vst [vmem:[#allocation2 + $0x10] sm:$0xff] %v225_v25  ;;  %249 = vst [vmem:[#allocation2 + $0x50] sm:$0xff] %v233_v26  ;;  %v226_v35 = vmax.f32 %v172_v27, 0.0  ;;  %v234_v36 = vmax.f32 %v204_v28, 0.0 }
  0xe3   :  { %239 = vst [vmem:[#allocation2] sm:$0xff] %v223_v31  ;;  %247 = vst [vmem:[#allocation2 + $0x40] sm:$0xff] %v231_v32  ;;  %v224_v37 = vmax.f32 %v164_v33, 0.0  ;;  %v232_v38 = vmax.f32 %v196_v34, 0.0 }
  0xe4   :  { %242 = vst [vmem:[#allocation2 + $0x18] sm:$0xff] %v226_v35  ;;  %250 = vst [vmem:[#allocation2 + $0x58] sm:$0xff] %v234_v36 }
  0xe5   :  { %240 = vst [vmem:[#allocation2 + $0x8] sm:$0xff] %v224_v37  ;;  %248 = vst [vmem:[#allocation2 + $0x48] sm:$0xff] %v232_v38  ;;  %v310_v39 = vpop.f32.mrb[4].mxu0  ;;  %v318_v40 = vpop.f32.mrb[4].mxu1 }
  0xe6   :  { %v185_v41 = vadd.f32 %v310_v39, %v271_v14  ;;  %v217_v42 = vadd.f32 %v318_v40, %v271_v14  ;;  %v176_v43 = vpop.f32.mrb[5].mxu0  ;;  %v208_v44 = vpop.f32.mrb[5].mxu1 }
  0xe7   :  { %v177_v45 = vadd.f32 %v271_v14, %v176_v43  ;;  %v209_v46 = vadd.f32 %v271_v14, %v208_v44  ;;  %v311_v47 = vpop.f32.mrb[6].mxu0  ;;  %v319_v48 = vpop.f32.mrb[6].mxu1 }
  0xe8   :  { %v229_v49 = vmax.f32 %v185_v41, 0.0  ;;  %v237_v50 = vmax.f32 %v217_v42, 0.0  ;;  %v188_v51 = vadd.f32 %v311_v47, %v271_v14  ;;  %v220_v52 = vadd.f32 %v319_v48, %v271_v14  ;;  %v179_v53 = vpop.f32.mrb[7].mxu0  ;;  %v211_v54 = vpop.f32.mrb[7].mxu1 }
  0xe9   :  { %v227_v55 = vmax.f32 %v177_v45, 0.0  ;;  %v235_v56 = vmax.f32 %v209_v46, 0.0  ;;  %v180_v57 = vadd.f32 %v271_v14, %v179_v53  ;;  %v212_v58 = vadd.f32 %v271_v14, %v211_v54 }
  0xea   :  { %245 = vst [vmem:[#allocation2 + $0x30] sm:$0xff] %v229_v49  ;;  %253 = vst [vmem:[#allocation2 + $0x70] sm:$0xff] %v237_v50  ;;  %v230_v59 = vmax.f32 %v188_v51, 0.0  ;;  %v238_v60 = vmax.f32 %v220_v52, 0.0 }
  0xeb   :  { %243 = vst [vmem:[#allocation2 + $0x20] sm:$0xff] %v227_v55  ;;  %251 = vst [vmem:[#allocation2 + $0x60] sm:$0xff] %v235_v56  ;;  %v228_v61 = vmax.f32 %v180_v57, 0.0  ;;  %v236_v62 = vmax.f32 %v212_v58, 0.0 }
  0xec   :  { %246 = vst [vmem:[#allocation2 + $0x38] sm:$0xff] %v230_v59  ;;  %254 = vst [vmem:[#allocation2 + $0x78] sm:$0xff] %v238_v60 }
  0xed   :  { %244 = vst [vmem:[#allocation2 + $0x28] sm:$0xff] %v228_v61  ;;  %252 = vst [vmem:[#allocation2 + $0x68] sm:$0xff] %v236_v62 }
  0xee   :  { %349 = shalt.err (!%p346_p4)
}
  0xef   :  { %s350_s9 = scalar_lea.hbm %s442_s3, 2048 }
  0xf0   :  { %p351_p5 = scmp.ne.s32.totalorder %s442_s3, %s350_s9  ;;  %p354_p6 = scmp.lt.u32.totalorder %s350_s9, %s442_s3 }
  0xf2   :  { %p356_p7 = pnand %p354_p6, %p351_p5 }
  0xf4   :  { %359 = shalt.err (!%p356_p7)
}
  0xf5   :  { %s364_s14 = smov 128   ;;  %s365_s15 = smov 8  }
  0xf6   :  { %266 = dma.vmem_to_hbm [thread:$0]  %s261_s2, 2048, %s442_s3, [#allocation3], %s364_s14, %s364_s14, %s365_s15  }
  0xf7   :  { %360 = dma.done.wait [#allocation3], 2048  }
  0xf8   :  { %361 = vsyncadd [#allocation3], 4294965248 }
  0xf9   :  { %270 = vsyncpa [#allocation3], 1 }

</bundles_post_ra>
